<compile_context>
chip_gen: v7x
topology: tpu7x:2x2x1
jax: 0.10.0
libtpu: 0.0.40
codegen_flags: <defaults>
</compile_context>

<pallas_src>
import jax
import jax.numpy as jnp
from jax.experimental import pallas as pl
from jax.experimental.pallas import tpu as pltpu


# --------------------------- parameter folding -----------------------------
def _fold_params(params, eps=1e-5):
    """Fold conv11+conv12 into one stacked affine and BN into scale/offset."""
    def w2d(name):
        w = params[name].astype(jnp.float32)
        return w.reshape(w.shape[0], w.shape[1])

    w11, w12 = w2d("w11"), w2d("w12")
    b11 = params["b11"].astype(jnp.float32)
    b12 = params["b12"].astype(jnp.float32)
    # cat(x11, x12) = W_a @ x + b_a
    W_a = jnp.concatenate([w11, jnp.dot(w12, w11)], axis=0)            # (16, L)
    b_a = jnp.concatenate([b11, jnp.dot(w12, b11) + b12], axis=0)      # (16,)

    def bn(tag):
        s = params["g" + tag] / jnp.sqrt(params["v" + tag] + eps)
        o = params["be" + tag] - params["m" + tag] * s
        return s.astype(jnp.float32), o.astype(jnp.float32)

    s12, o12 = bn("12")
    s13, o13 = bn("13")
    s14, o14 = bn("14")
    return dict(W_a=W_a, b_a=b_a,
                W13=w2d("w13"), b13=params["b13"].astype(jnp.float32),
                W14=w2d("w14"), b14=params["b14"].astype(jnp.float32),
                W15=w2d("w15"), b15=params["b15"].astype(jnp.float32),
                s12=s12, o12=o12, s13=s13, o13=o13, s14=s14, o14=o14)


# ------------------------------ Pallas kernel -------------------------------
def spectral_forward(x_nchw, params, tile=8192, compute_dtype=jnp.bfloat16):
    """x_nchw: (N, L, H, W) float32.  Returns (N, 32, H, W) float32."""
    N, L, H, W = x_nchw.shape
    HW = H * W
    OC = params["w15"].shape[0]                 # 32

    f = _fold_params(params)

    # ---- pack the 16 tiny parameter tensors into two constant slabs -------
    Kw = max(L, 16)

    def wblock(w):
        return jnp.pad(w, ((0, 0), (0, Kw - w.shape[1])))

    # row layout:    0: 16 W_a (K=L) | 16: 24 W13 (K=16) | 24: 32 W14[:, :16]
    #               32: 40 W14[:,16:24] | 40: 72 W15[:, :16]
    #               72:104 W15[:,16:24] | 104:136 W15[:,24:32]
    wslab = jnp.concatenate([
        wblock(f["W_a"]),
        wblock(f["W13"]),
        wblock(f["W14"][:, 0:16]),
        wblock(f["W14"][:, 16:24]),
        wblock(f["W15"][:, 0:16]),
        wblock(f["W15"][:, 16:24]),
        wblock(f["W15"][:, 24:32]),
    ], axis=0).astype(compute_dtype)            # (136, Kw)

    def col32(v):
        v = v.reshape(-1).astype(jnp.float32)
        return jnp.pad(v, (0, 32 - v.shape[0])).reshape(32, 1)

    # column layout: b_a b13 b14 b15 s12 o12 s13 o13 s14 o14
    vslab = jnp.concatenate([
        col32(f["b_a"]), col32(f["b13"]), col32(f["b14"]), col32(f["b15"]),
        col32(f["s12"]), col32(f["o12"]), col32(f["s13"]), col32(f["o13"]),
        col32(f["s14"]), col32(f["o14"]),
    ], axis=1)                                  # (32, 10) f32

    # ---- pixel tiling ------------------------------------------------------
    tile = max(128, (int(tile) // 128) * 128)
    hw_ceil = pl.cdiv(HW, 128) * 128
    tile = min(tile, hw_ceil)
    if HW % 128 == 0 and HW % tile != 0:
        t = tile
        while HW % t != 0:
            t -= 128
        if t >= tile // 2:                      # take a dividing tile only if close
            tile = t
    hw_pad = pl.cdiv(HW, tile) * tile
    # keep >= 2 total grid steps where possible so both v7x TensorCores get work
    if N * (hw_pad // tile) < 2 and tile > 128:
        tile = ((tile // 2 + 127) // 128) * 128
        hw_pad = pl.cdiv(HW, tile) * tile

    x3 = x_nchw.reshape(N, L, HW).astype(jnp.float32)     # free reshape
    if hw_pad != HW:
        x3 = jnp.pad(x3, ((0, 0), (0, 0), (0, hw_pad - HW)))

    def kernel(x_ref, w_ref, v_ref, out_ref):
        cdt = w_ref.dtype
        xb = x_ref[...].astype(cdt)                                    # (L, T)

        w_a  = w_ref[0:16, 0:L]
        w13  = w_ref[16:24, 0:16]
        w14a = w_ref[24:32, 0:16];   w14b = w_ref[32:40, 0:8]
        w15a = w_ref[40:72, 0:16];   w15b = w_ref[72:104, 0:8]
        w15c = w_ref[104:136, 0:8]

        b_a  = v_ref[0:16, 0:1];   b13  = v_ref[0:8, 1:2]
        b14  = v_ref[0:8, 2:3];    b15  = v_ref[0:32, 3:4]
        s12  = v_ref[0:16, 4:5];   o12  = v_ref[0:16, 5:6]
        s13a = v_ref[0:16, 6:7];   o13a = v_ref[0:16, 7:8]
        s13b = v_ref[16:24, 6:7];  o13b = v_ref[16:24, 7:8]
        s14a = v_ref[0:16, 8:9];   o14a = v_ref[0:16, 9:10]
        s14b = v_ref[16:24, 8:9];  o14b = v_ref[16:24, 9:10]
        s14c = v_ref[24:32, 8:9];  o14c = v_ref[24:32, 9:10]

        # fused conv11+conv12: one dot gives cat(x11, x12)       (16, T) f32
        h12 = jnp.dot(w_a, xb, preferred_element_type=jnp.float32) + b_a

        # bn12 + ReLU, conv13                                     (8, T) f32
        a12 = jnp.maximum(h12 * s12 + o12, 0.0).astype(cdt)
        x13 = jnp.dot(w13, a12, preferred_element_type=jnp.float32) + b13

        # bn13 + ReLU per source block (no concat), conv14        (8, T) f32
        a13a = jnp.maximum(h12 * s13a + o13a, 0.0).astype(cdt)
        a13b = jnp.maximum(x13 * s13b + o13b, 0.0).astype(cdt)
        x14 = (jnp.dot(w14a, a13a, preferred_element_type=jnp.float32)
               + jnp.dot(w14b, a13b, preferred_element_type=jnp.float32) + b14)

        # bn14 + ReLU per source block, conv15                    (32, T) f32
        a14a = jnp.maximum(h12 * s14a + o14a, 0.0).astype(cdt)
        a14b = jnp.maximum(x13 * s14b + o14b, 0.0).astype(cdt)
        a14c = jnp.maximum(x14 * s14c + o14c, 0.0).astype(cdt)
        out_ref[...] = (jnp.dot(w15a, a14a, preferred_element_type=jnp.float32)
                        + jnp.dot(w15b, a14b, preferred_element_type=jnp.float32)
                        + jnp.dot(w15c, a14c, preferred_element_type=jnp.float32)
                        + b15).astype(out_ref.dtype)

    out = pl.pallas_call(
        kernel,
        out_shape=jax.ShapeDtypeStruct((N, OC, hw_pad), jnp.float32),
        grid=(N, hw_pad // tile),
        in_specs=[
            pl.BlockSpec((pl.Squeezed(), L, tile), lambda n, t: (n, 0, t)),
            pl.BlockSpec(wslab.shape, lambda n, t: (0, 0)),
            pl.BlockSpec(vslab.shape, lambda n, t: (0, 0)),
        ],
        out_specs=pl.BlockSpec((pl.Squeezed(), OC, tile), lambda n, t: (n, 0, t)),
        compiler_params=pltpu.CompilerParams(
            dimension_semantics=("parallel", "parallel"),
            vmem_limit_bytes=48 * 1024 * 1024),     # headroom on v7x's 64 MiB VMEM
    )(x3, wslab, vslab)

    if hw_pad != HW:
        out = out[:, :, :HW]
    return out.reshape(N, OC, H, W)                 # free reshape


# --------------------------- pure-JAX references ----------------------------
def spectral_ref(x_nchw, params):
    """Full-f32 reference with the original module's structure."""
    N, L, H, W = x_nchw.shape
    x = x_nchw.reshape(N, L, H * W)
    eps = 1e-5

    def conv(wn, bn_, h):
        w = params[wn].reshape(params[wn].shape[0], params[wn].shape[1])
        y = jnp.einsum("oc,ncp->nop", w, h, precision=jax.lax.Precision.HIGHEST)
        return y + params[bn_].reshape(1, -1, 1)

    def bnrelu(tag, h):
        s = params["g" + tag] / jnp.sqrt(params["v" + tag] + eps)
        o = params["be" + tag] - params["m" + tag] * s
        return jnp.maximum(h * s.reshape(1, -1, 1) + o.reshape(1, -1, 1), 0.0)

    x11 = conv("w11", "b11", x)
    x12 = conv("w12", "b12", x11)
    x13 = conv("w13", "b13", bnrelu("12", jnp.concatenate([x11, x12], axis=1)))
    x14 = conv("w14", "b14", bnrelu("13", jnp.concatenate([x11, x12, x13], axis=1)))
    x16 = conv("w15", "b15", bnrelu("14", jnp.concatenate([x11, x12, x13, x14], axis=1)))
    return x16.reshape(N, -1, H, W)


def spectral_matched_ref(x_nchw, params, compute_dtype=jnp.bfloat16):
    """Mirrors the kernel math exactly (fused conv11/12, per-block BN, split-K
    dots, compute_dtype MXU operands with f32 accumulation) in plain JAX."""
    N, L, H, W = x_nchw.shape
    f = _fold_params(params)
    x = x_nchw.reshape(N, L, H * W).astype(jnp.float32)

    def dot(w, h):
        return jnp.einsum("oc,ncp->nop", w.astype(compute_dtype),
                          h.astype(compute_dtype),
                          preferred_element_type=jnp.float32)

    col = lambda v: v.reshape(1, -1, 1)
    h12 = dot(f["W_a"], x) + col(f["b_a"])
    a12 = jnp.maximum(h12 * col(f["s12"]) + col(f["o12"]), 0.0)
    x13 = dot(f["W13"], a12) + col(f["b13"])
    a13a = jnp.maximum(h12 * col(f["s13"][:16]) + col(f["o13"][:16]), 0.0)
    a13b = jnp.maximum(x13 * col(f["s13"][16:24]) + col(f["o13"][16:24]), 0.0)
    x14 = dot(f["W14"][:, :16], a13a) + dot(f["W14"][:, 16:24], a13b) + col(f["b14"])
    a14a = jnp.maximum(h12 * col(f["s14"][:16]) + col(f["o14"][:16]), 0.0)
    a14b = jnp.maximum(x13 * col(f["s14"][16:24]) + col(f["o14"][16:24]), 0.0)
    a14c = jnp.maximum(x14 * col(f["s14"][24:32]) + col(f["o14"][24:32]), 0.0)
    x16 = (dot(f["W15"][:, :16], a14a) + dot(f["W15"][:, 16:24], a14b)
           + dot(f["W15"][:, 24:32], a14c) + col(f["b15"]))
    return x16.reshape(N, 32, H, W)


# ------------------------------- init helpers -------------------------------
def init_params(key, L):
    ks = jax.random.split(key, 13)
    p = {}

    def u(k, shape, fan_in):
        b = 1.0 / (fan_in ** 0.5)
        return jax.random.uniform(k, shape, jnp.float32, -b, b)

    p["w11"] = u(ks[0], (8, L, 1, 1), L);    p["b11"] = u(ks[1], (8,), L)
    p["w12"] = u(ks[2], (8, 8, 1, 1), 8);    p["b12"] = u(ks[3], (8,), 8)
    p["w13"] = u(ks[4], (8, 16, 1, 1), 16);  p["b13"] = u(ks[5], (8,), 16)
    p["w14"] = u(ks[6], (8, 24, 1, 1), 24);  p["b14"] = u(ks[7], (8,), 24)
    p["w15"] = u(ks[8], (32, 32, 1, 1), 32); p["b15"] = u(ks[9], (32,), 32)

    # eval-mode BatchNorm2d running stats + affine (deterministic, non-trivial).
    def bn(k, C, tag):
        k1, k2 = jax.random.split(k)
        p["g" + tag] = 1.0 + 0.1 * jax.random.normal(k1, (C,), jnp.float32)
        p["be" + tag] = 0.05 * jax.random.normal(k2, (C,), jnp.float32)
        p["m" + tag] = jnp.linspace(-0.1, 0.1, C, dtype=jnp.float32)
        p["v" + tag] = jnp.linspace(0.9, 1.1, C, dtype=jnp.float32)

    bn(ks[10], 16, "12")
    bn(ks[11], 24, "13")
    bn(ks[12], 32, "14")
    return p


if __name__ == "__main__":
    N, L, H, W = 2, 4, 16, 16                 # batch, in-channels, spatial
    key = jax.random.PRNGKey(0)
    kx, kp = jax.random.split(key)
    x = jax.random.normal(kx, (N, L, H, W), jnp.float32)
    params = init_params(kp, L)

    ref = spectral_ref(x, params)             # original-module f32 semantics
    ref_m = spectral_matched_ref(x, params)   # kernel-math (bf16 operands) ref

    # Small tile so the demo exercises a multi-step (batch, pixel-tile) grid.
    out = jax.block_until_ready(spectral_forward(x, params, tile=128))
    assert out.shape == (N, 32, H, W)
    err_struct = float(jnp.max(jnp.abs(out - ref_m)))   # structural correctness
    err_full = float(jnp.max(jnp.abs(out - ref)))       # bf16-vs-f32 precision gap
    assert err_struct < 1e-3, f"kernel vs matched-math ref max abs err {err_struct}"
    assert err_full < 5e-2, f"kernel vs f32 ref max abs err {err_full}"

    # Default (production) tile: collapses to one pixel tile per image here.
    out_big = jax.block_until_ready(spectral_forward(x, params))
    assert float(jnp.max(jnp.abs(out_big - out))) < 1e-5

    print("KERNEL_OK")
</pallas_src>

<mosaic_0001>
module attributes {stable_mosaic.version = 11 : i64} {
  func.func @kernel(%arg0: i32, %arg1: i32, %arg2: memref<1x4x128xf32, #tpu.memory_space<vmem>>, %arg3: memref<136x16xbf16, #tpu.memory_space<vmem>>, %arg4: memref<32x10xf32, #tpu.memory_space<vmem>>, %arg5: memref<1x32x128xf32, #tpu.memory_space<vmem>>) attributes {dimension_semantics = [#tpu.dimension_semantics<parallel>, #tpu.dimension_semantics<parallel>], iteration_bounds = array<i64: 2, 2>, scalar_prefetch = 0 : i64, scratch_operands = 0 : i64, tpu.core_type = #tpu.core_type<tc>, window_params = [{transform_indices = @transform_0, window_bounds = array<i64: 1, 4, 128>}, {pipeline_mode = #tpu.pipeline_mode<synchronous>, transform_indices = @transform_1, window_bounds = array<i64: 136, 16>}, {pipeline_mode = #tpu.pipeline_mode<synchronous>, transform_indices = @transform_2, window_bounds = array<i64: 32, 10>}, {transform_indices = @transform_3, window_bounds = array<i64: 1, 32, 128>}]} {
    %c0 = arith.constant 0 : index
    %c0_0 = arith.constant 0 : index
    %c0_1 = arith.constant 0 : index
    %0 = vector.load %arg2[%c0, %c0_0, %c0_1] : memref<1x4x128xf32, #tpu.memory_space<vmem>>, vector<1x4x128xf32>
    %1 = vector.shape_cast %0 : vector<1x4x128xf32> to vector<4x128xf32>
    %2 = arith.truncf %1 : vector<4x128xf32> to vector<4x128xbf16>
    %c0_2 = arith.constant 0 : index
    %c0_3 = arith.constant 0 : index
    %3 = vector.load %arg3[%c0_2, %c0_3] : memref<136x16xbf16, #tpu.memory_space<vmem>>, vector<16x4xbf16>
    %c16 = arith.constant 16 : index
    %c0_4 = arith.constant 0 : index
    %4 = vector.load %arg3[%c16, %c0_4] : memref<136x16xbf16, #tpu.memory_space<vmem>>, vector<8x16xbf16>
    %c24 = arith.constant 24 : index
    %c0_5 = arith.constant 0 : index
    %5 = vector.load %arg3[%c24, %c0_5] : memref<136x16xbf16, #tpu.memory_space<vmem>>, vector<8x16xbf16>
    %c32 = arith.constant 32 : index
    %c0_6 = arith.constant 0 : index
    %6 = vector.load %arg3[%c32, %c0_6] : memref<136x16xbf16, #tpu.memory_space<vmem>>, vector<8x8xbf16>
    %c40 = arith.constant 40 : index
    %c0_7 = arith.constant 0 : index
    %7 = vector.load %arg3[%c40, %c0_7] : memref<136x16xbf16, #tpu.memory_space<vmem>>, vector<32x16xbf16>
    %c72 = arith.constant 72 : index
    %c0_8 = arith.constant 0 : index
    %8 = vector.load %arg3[%c72, %c0_8] : memref<136x16xbf16, #tpu.memory_space<vmem>>, vector<32x8xbf16>
    %c104 = arith.constant 104 : index
    %c0_9 = arith.constant 0 : index
    %9 = vector.load %arg3[%c104, %c0_9] : memref<136x16xbf16, #tpu.memory_space<vmem>>, vector<32x8xbf16>
    %c0_10 = arith.constant 0 : index
    %c0_11 = arith.constant 0 : index
    %10 = vector.load %arg4[%c0_10, %c0_11] : memref<32x10xf32, #tpu.memory_space<vmem>>, vector<16x1xf32>
    %c0_12 = arith.constant 0 : index
    %c1 = arith.constant 1 : index
    %11 = vector.load %arg4[%c0_12, %c1] : memref<32x10xf32, #tpu.memory_space<vmem>>, vector<8x1xf32>
    %c0_13 = arith.constant 0 : index
    %c2 = arith.constant 2 : index
    %12 = vector.load %arg4[%c0_13, %c2] : memref<32x10xf32, #tpu.memory_space<vmem>>, vector<8x1xf32>
    %c0_14 = arith.constant 0 : index
    %c3 = arith.constant 3 : index
    %13 = vector.load %arg4[%c0_14, %c3] : memref<32x10xf32, #tpu.memory_space<vmem>>, vector<32x1xf32>
    %c0_15 = arith.constant 0 : index
    %c4 = arith.constant 4 : index
    %14 = vector.load %arg4[%c0_15, %c4] : memref<32x10xf32, #tpu.memory_space<vmem>>, vector<16x1xf32>
    %c0_16 = arith.constant 0 : index
    %c5 = arith.constant 5 : index
    %15 = vector.load %arg4[%c0_16, %c5] : memref<32x10xf32, #tpu.memory_space<vmem>>, vector<16x1xf32>
    %c0_17 = arith.constant 0 : index
    %c6 = arith.constant 6 : index
    %16 = vector.load %arg4[%c0_17, %c6] : memref<32x10xf32, #tpu.memory_space<vmem>>, vector<16x1xf32>
    %c0_18 = arith.constant 0 : index
    %c7 = arith.constant 7 : index
    %17 = vector.load %arg4[%c0_18, %c7] : memref<32x10xf32, #tpu.memory_space<vmem>>, vector<16x1xf32>
    %c16_19 = arith.constant 16 : index
    %c6_20 = arith.constant 6 : index
    %18 = vector.load %arg4[%c16_19, %c6_20] : memref<32x10xf32, #tpu.memory_space<vmem>>, vector<8x1xf32>
    %c16_21 = arith.constant 16 : index
    %c7_22 = arith.constant 7 : index
    %19 = vector.load %arg4[%c16_21, %c7_22] : memref<32x10xf32, #tpu.memory_space<vmem>>, vector<8x1xf32>
    %c0_23 = arith.constant 0 : index
    %c8 = arith.constant 8 : index
    %20 = vector.load %arg4[%c0_23, %c8] : memref<32x10xf32, #tpu.memory_space<vmem>>, vector<16x1xf32>
    %c0_24 = arith.constant 0 : index
    %c9 = arith.constant 9 : index
    %21 = vector.load %arg4[%c0_24, %c9] : memref<32x10xf32, #tpu.memory_space<vmem>>, vector<16x1xf32>
    %c16_25 = arith.constant 16 : index
    %c8_26 = arith.constant 8 : index
    %22 = vector.load %arg4[%c16_25, %c8_26] : memref<32x10xf32, #tpu.memory_space<vmem>>, vector<8x1xf32>
    %c16_27 = arith.constant 16 : index
    %c9_28 = arith.constant 9 : index
    %23 = vector.load %arg4[%c16_27, %c9_28] : memref<32x10xf32, #tpu.memory_space<vmem>>, vector<8x1xf32>
    %c24_29 = arith.constant 24 : index
    %c8_30 = arith.constant 8 : index
    %24 = vector.load %arg4[%c24_29, %c8_30] : memref<32x10xf32, #tpu.memory_space<vmem>>, vector<8x1xf32>
    %c24_31 = arith.constant 24 : index
    %c9_32 = arith.constant 9 : index
    %25 = vector.load %arg4[%c24_31, %c9_32] : memref<32x10xf32, #tpu.memory_space<vmem>>, vector<8x1xf32>
    %cst = arith.constant dense<0.000000e+00> : vector<16x128xf32>
    %26 = tpu.matmul %3, %2, %cst {dimension_numbers = #tpu.dot_dimension_numbers<[1], [0], [0], [1], [0, 0, 1, 1], [], []>} : vector<16x4xbf16>, vector<4x128xbf16>, vector<16x128xf32> -> vector<16x128xf32>
    %27 = vector.broadcast %10 : vector<16x1xf32> to vector<16x128xf32>
    %28 = arith.addf %26, %27 : vector<16x128xf32>
    %29 = vector.broadcast %14 : vector<16x1xf32> to vector<16x128xf32>
    %30 = arith.mulf %28, %29 : vector<16x128xf32>
    %31 = vector.broadcast %15 : vector<16x1xf32> to vector<16x128xf32>
    %32 = arith.addf %30, %31 : vector<16x128xf32>
    %cst_33 = arith.constant 0.000000e+00 : f32
    %33 = vector.broadcast %cst_33 : f32 to vector<16x128xf32>
    %34 = arith.maximumf %32, %33 : vector<16x128xf32>
    %35 = arith.truncf %34 : vector<16x128xf32> to vector<16x128xbf16>
    %cst_34 = arith.constant dense<0.000000e+00> : vector<8x128xf32>
    %36 = tpu.matmul %4, %35, %cst_34 {dimension_numbers = #tpu.dot_dimension_numbers<[1], [0], [0], [1], [0, 0, 1, 1], [], []>} : vector<8x16xbf16>, vector<16x128xbf16>, vector<8x128xf32> -> vector<8x128xf32>
    %37 = vector.broadcast %11 : vector<8x1xf32> to vector<8x128xf32>
    %38 = arith.addf %36, %37 : vector<8x128xf32>
    %39 = vector.broadcast %16 : vector<16x1xf32> to vector<16x128xf32>
    %40 = arith.mulf %28, %39 : vector<16x128xf32>
    %41 = vector.broadcast %17 : vector<16x1xf32> to vector<16x128xf32>
    %42 = arith.addf %40, %41 : vector<16x128xf32>
    %cst_35 = arith.constant 0.000000e+00 : f32
    %43 = vector.broadcast %cst_35 : f32 to vector<16x128xf32>
    %44 = arith.maximumf %42, %43 : vector<16x128xf32>
    %45 = arith.truncf %44 : vector<16x128xf32> to vector<16x128xbf16>
    %46 = vector.broadcast %18 : vector<8x1xf32> to vector<8x128xf32>
    %47 = arith.mulf %38, %46 : vector<8x128xf32>
    %48 = vector.broadcast %19 : vector<8x1xf32> to vector<8x128xf32>
    %49 = arith.addf %47, %48 : vector<8x128xf32>
    %cst_36 = arith.constant 0.000000e+00 : f32
    %50 = vector.broadcast %cst_36 : f32 to vector<8x128xf32>
    %51 = arith.maximumf %49, %50 : vector<8x128xf32>
    %52 = arith.truncf %51 : vector<8x128xf32> to vector<8x128xbf16>
    %cst_37 = arith.constant dense<0.000000e+00> : vector<8x128xf32>
    %53 = tpu.matmul %5, %45, %cst_37 {dimension_numbers = #tpu.dot_dimension_numbers<[1], [0], [0], [1], [0, 0, 1, 1], [], []>} : vector<8x16xbf16>, vector<16x128xbf16>, vector<8x128xf32> -> vector<8x128xf32>
    %cst_38 = arith.constant dense<0.000000e+00> : vector<8x128xf32>
    %54 = tpu.matmul %6, %52, %cst_38 {dimension_numbers = #tpu.dot_dimension_numbers<[1], [0], [0], [1], [0, 0, 1, 1], [], []>} : vector<8x8xbf16>, vector<8x128xbf16>, vector<8x128xf32> -> vector<8x128xf32>
    %55 = arith.addf %53, %54 : vector<8x128xf32>
    %56 = vector.broadcast %12 : vector<8x1xf32> to vector<8x128xf32>
    %57 = arith.addf %55, %56 : vector<8x128xf32>
    %58 = vector.broadcast %20 : vector<16x1xf32> to vector<16x128xf32>
    %59 = arith.mulf %28, %58 : vector<16x128xf32>
    %60 = vector.broadcast %21 : vector<16x1xf32> to vector<16x128xf32>
    %61 = arith.addf %59, %60 : vector<16x128xf32>
    %cst_39 = arith.constant 0.000000e+00 : f32
    %62 = vector.broadcast %cst_39 : f32 to vector<16x128xf32>
    %63 = arith.maximumf %61, %62 : vector<16x128xf32>
    %64 = arith.truncf %63 : vector<16x128xf32> to vector<16x128xbf16>
    %65 = vector.broadcast %22 : vector<8x1xf32> to vector<8x128xf32>
    %66 = arith.mulf %38, %65 : vector<8x128xf32>
    %67 = vector.broadcast %23 : vector<8x1xf32> to vector<8x128xf32>
    %68 = arith.addf %66, %67 : vector<8x128xf32>
    %cst_40 = arith.constant 0.000000e+00 : f32
    %69 = vector.broadcast %cst_40 : f32 to vector<8x128xf32>
    %70 = arith.maximumf %68, %69 : vector<8x128xf32>
    %71 = arith.truncf %70 : vector<8x128xf32> to vector<8x128xbf16>
    %72 = vector.broadcast %24 : vector<8x1xf32> to vector<8x128xf32>
    %73 = arith.mulf %57, %72 : vector<8x128xf32>
    %74 = vector.broadcast %25 : vector<8x1xf32> to vector<8x128xf32>
    %75 = arith.addf %73, %74 : vector<8x128xf32>
    %cst_41 = arith.constant 0.000000e+00 : f32
    %76 = vector.broadcast %cst_41 : f32 to vector<8x128xf32>
    %77 = arith.maximumf %75, %76 : vector<8x128xf32>
    %78 = arith.truncf %77 : vector<8x128xf32> to vector<8x128xbf16>
    %cst_42 = arith.constant dense<0.000000e+00> : vector<32x128xf32>
    %79 = tpu.matmul %7, %64, %cst_42 {dimension_numbers = #tpu.dot_dimension_numbers<[1], [0], [0], [1], [0, 0, 1, 1], [], []>} : vector<32x16xbf16>, vector<16x128xbf16>, vector<32x128xf32> -> vector<32x128xf32>
    %cst_43 = arith.constant dense<0.000000e+00> : vector<32x128xf32>
    %80 = tpu.matmul %8, %71, %cst_43 {dimension_numbers = #tpu.dot_dimension_numbers<[1], [0], [0], [1], [0, 0, 1, 1], [], []>} : vector<32x8xbf16>, vector<8x128xbf16>, vector<32x128xf32> -> vector<32x128xf32>
    %81 = arith.addf %79, %80 : vector<32x128xf32>
    %cst_44 = arith.constant dense<0.000000e+00> : vector<32x128xf32>
    %82 = tpu.matmul %9, %78, %cst_44 {dimension_numbers = #tpu.dot_dimension_numbers<[1], [0], [0], [1], [0, 0, 1, 1], [], []>} : vector<32x8xbf16>, vector<8x128xbf16>, vector<32x128xf32> -> vector<32x128xf32>
    %83 = arith.addf %81, %82 : vector<32x128xf32>
    %84 = vector.broadcast %13 : vector<32x1xf32> to vector<32x128xf32>
    %85 = arith.addf %83, %84 : vector<32x128xf32>
    %c0_45 = arith.constant 0 : index
    %c0_46 = arith.constant 0 : index
    %c0_47 = arith.constant 0 : index
    %86 = vector.load %arg5[%c0_45, %c0_46, %c0_47] : memref<1x32x128xf32, #tpu.memory_space<vmem>>, vector<1x32x128xf32>
    %87 = vector.shape_cast %86 : vector<1x32x128xf32> to vector<32x128xf32>
    %88 = vector.shape_cast %85 : vector<32x128xf32> to vector<1x32x128xf32>
    tpu.vector_store %arg5[%c0_45, %c0_46, %c0_47], %88 {strides = array<i32>} : memref<1x32x128xf32, #tpu.memory_space<vmem>>, vector<1x32x128xf32>,
    return
  }
  func.func @transform_0(%arg0: i32, %arg1: i32) -> (i32, i32, i32) {
    %c0_i32 = arith.constant 0 : i32
    %c0_i32_0 = arith.constant 0 : i32
    return %arg0, %c0_i32, %arg1 : i32, i32, i32
  }
  func.func @transform_1(%arg0: i32, %arg1: i32) -> (i32, i32) {
    %c0_i32 = arith.constant 0 : i32
    %c0_i32_0 = arith.constant 0 : i32
    %c0_i32_1 = arith.constant 0 : i32
    return %c0_i32, %c0_i32_0 : i32, i32
  }
  func.func @transform_2(%arg0: i32, %arg1: i32) -> (i32, i32) {
    %c0_i32 = arith.constant 0 : i32
    %c0_i32_0 = arith.constant 0 : i32
    %c0_i32_1 = arith.constant 0 : i32
    return %c0_i32, %c0_i32_0 : i32, i32
  }
  func.func @transform_3(%arg0: i32, %arg1: i32) -> (i32, i32, i32) {
    %c0_i32 = arith.constant 0 : i32
    %c0_i32_0 = arith.constant 0 : i32
    return %arg0, %c0_i32, %arg1 : i32, i32, i32
  }
}

</mosaic_0001>

<bundles_post_ra>
// kernel: tpu_custom_call.1
= control target key start
LH: loop header
LB: loop body
LE: loop exit
PB: predicated region body
PF: predicated region fallthrough
CT: control target
= control target key end

     0   :  { %8 = vsyncpa [#allocation3], 0  ;;  %s1440_s0 = inlined_call_operand.vmem [shape: f32[2,4,256], index: 0, kind: input, shape index: {}]   ;;  %s1441_s1 = inlined_call_operand.vmem [shape: bf16[136,16], index: 1, kind: input, shape index: {}]   ;;  %s1442_s2 = inlined_call_operand.vmem [shape: f32[32,10], index: 2, kind: input, shape index: {}]   ;;  %s1443_s3 = inlined_call_operand.hbm [shape: f32[2,32,256], index: 3, kind: output, shape index: {}]  }
   0x1   :  { %10 = vsyncpa [#allocation3 + $0x1], 0  ;;  %s1200_s12 = smov 0   ;;  %s1202_s13 = smov 0  }
   0x2   :  { %s1204_s14 = smov 0   ;;  %s1206_s15 = smov 0  }
   0x3   :  { %s1208_s16 = smov 0   ;;  %s1210_s17 = smov 0  }
   0x4   :  { %s1212_s18 = smov 0   ;;  %s1214_s19 = smov 0  }
   0x5 LB: > { %s858_s20 = sadd.s32 4294967295, %s1162_s19   ;;  %s859_s21 = sadd.s32 4294967294, %s1162_s19   ;;  %s1162_s19 = sphi %s1214_s19, %s16_s19   ;;  %s1158_s18 = sphi %s1212_s18, %s1452_s18   ;;  %s1154_s17 = sphi %s1210_s17, %s1451_s17   ;;  %s1150_s16 = sphi %s1208_s16, %s1450_s16   ;;  %s1146_s15 = sphi %s1206_s15, %s1449_s15   ;;  %s1142_s14 = sphi %s1204_s14, %s1448_s14   ;;  %s1138_s13 = sphi %s1202_s13, %s1447_s13   ;;  %s1134_s12 = sphi %s1200_s12, %s1446_s12  }
   0x6   : > { %s25_s22 = sadd.s32 1, %s1154_s17  ;;  %s28_s23 = sadd.s32 1, %s1158_s18 }
   0x7   : > { %p26_p0 = scmp.ge.s32.totalorder %s25_s22, 2  ;;  %p117_p1 = scmp.ne.s32.totalorder %s1142_s14, %s1138_s13 }
   0x8   : > { %p118_p2 = scmp.eq.s32.totalorder %s858_s20, 3  ;;  %p123_p5 = scmp.ne.s32.totalorder %s1138_s13, %s1134_s12 }
   0x9   : > { %s1454_s22 = smov (%p26_p0, %s25_s22), 0  ;;  %s1456_s23 = smov (!%p26_p0, %s28_s23), %s1158_s18 }
   0xa   : > { %s103_s24 = ssub.s32 %s1154_s17, %s1454_s22  ;;  %p1251_p3 = por %p118_p2, %p117_p1 }
   0xb   : > { %p30_p4 = scmp.ge.s32.totalorder %s1456_s23, 2  ;;  %p124_p6 = scmp.eq.s32.totalorder %s859_s21, 3 }
   0xc   : > { %p862_p7 = scmp.ge.s32.totalorder %s1162_s19, 1  ;;  %p159_p9 = scmp.lt.s32.totalorder %s1162_s19, 5 }
   0xd   : > { %s1458_s23 = smov (%p30_p4, %s1456_s23), 0  ;;  %p1260_p8 = por %p124_p6, %p123_p5 }
   0xe   : > { %s102_s27 = ssub.s32 %s1158_s18, %s1458_s23  ;;  %s107_s28 = sadd.s32 1, %s1142_s14 }
   0xf   : > { %s104_s29 = sor.u32 %s103_s24, %s102_s27  ;;  %p160_p10 = pnand %p862_p7, %p159_p9 }
  0x10   : > { %p105_p11 = scmp.eq.s32.totalorder %s104_s29, 0  ;;  %p186_p12 = scmp.lt.s32.totalorder (!%p160_p10), %s1150_s16, 1  ;;  %v1164_v0 = vmov (!%p160_p10), 0.0   ;;  %vm1165_vm0 = vmmov (!%p160_p10), 0   ;;  %v1166_v1 = vmov (!%p160_p10), 4   ;;  %v1280_v2 = vld [vmem:[%s1442_s2] sm:$0xff] (!%p160_p10) }
  0x11   : > { %163 = sbr.rel (%p160_p10) target bundleno = 951 (0x3b7), region = 32  ;;  %p188_p13 = scmp.lt.s32.totalorder (!%p160_p10), %s1146_s15, 1  ;;  %905 = vmatprep.subr.bf16.mxu1 (!%p160_p10), %v1164_v0  ;;  %907 = vmatprep.mubr.msk.bf16.mxu1 (!%p160_p10), %vm1165_vm0, %v1164_v0  ;;  %vm237_vm1 = vcmask (!%p160_p10), 1041408   ;;  %v1167_v3 = vmov (!%p160_p10), 0   ;;  %v1288_v4 = vld [vmem:[%s1442_s2 + $0x8] sm:$0xff] (!%p160_p10)  ;;  %v1061_v8 = vld [vmem:[%s1441_s1] sm:$0xff] (!%p160_p10)  }
  0x12   : > { %s1269_s30 = scalar_select %p105_p11, %s1142_s14, %s107_s28  }
  0x13   : > { %1044 = vset.pattern.permute.xlu1 (!%p160_p10), %v1166_v1  ;;  %917 = vmatprep.subr.bf16.mxu0 (!%p160_p10), %v1164_v0  ;;  %v1168_v9 = vmov (!%p160_p10), 5   ;;  %vm233_vm2 = vcmask (!%p160_p10), 31744   ;;  %v1169_v10 = vmov (!%p160_p10), 1   ;;  %v1307_v11 = vld [vmem:[%s1442_s2 + $0x10] sm:$0xff] (!%p160_p10)  ;;  %v1170_v12 = vmov (!%p160_p10), 6   ;;  %v217_v1 = vld [vmem:[%s1442_s2 + $0x18] sm:$0xff] (!%p160_p10) }
  0x14   : > { %283 = vperm.xlu1 (!%p160_p10), %1044, %v1280_v2   ;;  %1043 = vset.pattern.permute.xlu0 (!%p160_p10), %v1167_v3  ;;  %v1171_v13 = vmov (!%p160_p10), 7   ;;  %v1172_v14 = vmov (!%p160_p10), 8   ;;  %v1173_v15 = vmov (!%p160_p10), 9   ;;  %v199_v62 = vld [vmem:[%s1441_s1 + $0x8] sm:$0xf] (!%p160_p10)  ;;  %vm309_vm3 = vcmask (!%p160_p10), 130048  }
  0x15   : > { %220 = vperm.xlu0 (!%p160_p10), %1043, %v1280_v2   ;;  %919 = vmatprep.mubr.msk.bf16.mxu0 (!%p160_p10), %vm1165_vm0, %v1164_v0  ;;  %v200_v63 = vld [vmem:[%s1441_s1 + $0xc] sm:$0xf] (!%p160_p10)  ;;  %v1174_v3 = vmov (!%p160_p10), 2   ;;  %vm393_vm4 = vcmask (!%p160_p10), 1043456   ;;  %vm389_vm5 = vcmask (!%p160_p10), 64512   ;;  %s884_s21 = sshll.u32 (!%p160_p10), %s1150_s16, 3 }
  0x18   : > { %s187_s4 = scalar_select %p186_p12, %s1150_s16, 1  ;;  %287 = vperm.xlu1 %1044, %v1288_v4  }
  0x19   : > { %s189_s7 = scalar_select %p188_p13, %s1146_s15, 1  ;;  %225 = vperm.xlu0 %1043, %v1288_v4  }
  0x1a   : > { %s864_s8 = sshll.u32 %s187_s4, 1 }
  0x1b   : > { %s191_s11 = sadd.s32 %s864_s8, %s189_s7  ;;  %s1176_s8 = smov [#allocation2]  }
  0x1c   : > { %s865_s20 = sshll.u32 %s191_s11, 2  ;;  %1046 = vset.pattern.permute.xlu1 %v1168_v9  ;;  %s1072_s9 = sshll.u32 %s1176_s8, 4  ;;  %s1073_s9 = int_to_ptr.vmem [resolvable:$false] %s1072_s9 }
  0x1d   : > { %s193_s27 = scalar_lea.vmem %s1440_s0, %s865_s20  ;;  %297 = vperm.xlu1 %1046, %v1288_v4   ;;  %1045 = vset.pattern.permute.xlu0 %v1168_v9  ;;  %s183_s20 = sand.u32 1, %s1138_s13  }
  0x1e   : > { %v195_v5 = vld [vmem:[%s193_s27] sm:$0xf]  ;;  %293 = vperm.xlu0 %1045, %v1280_v2   ;;  %s863_s24 = sshll.u32 %s183_s20, 5  ;;  %s774_s27 = sadd.s32 %s1146_s15, %s884_s21 }
  0x1f   : > { %v196_v6 = vpack.c.bf16 %v195_v5, %v195_v5  ;;  %s185_s28 = scalar_lea.vmem [#allocation2], %s863_s24  ;;  %s885_s4 = sshll.u32 %s774_s27, 7 }
  0x20   : > { %s777_s29 = sshll.u32 %s185_s28, 4  ;;  %s1386_s5 = scalar_lea.hbm %s1443_s3, %s885_s4  ;;  %s1381_s29 = int_to_ptr.vmem [resolvable:$true] %s777_s29 }
  0x21   : > { %v239_v7 = vsel %vm237_vm1, %v196_v6, 0  ;;  %1047 = vset.pattern.permute.xlu1 %v1169_v10  ;;  %s1388_s6 = scalar_lea.sflag [#allocation3], %s183_s20  ;;  %s1068_s7 = scalar_lea.vmem %s1381_s29, 512 }
  0x22   : > { %906 = vmatpush3.bf16.msra.mxu1 %v239_v7  ;;  %306 = vperm.xlu1 %1047, %v1280_v2   ;;  %p1069_p0 = scmp.ne.s32.totalorder %s1381_s29, %s1068_s7  ;;  %s1074_s10 = scalar_lea.vmem %s1073_s9, 1024 }
  0x23   : > { %911 = vmatprep.subr.bf16.mxu1 %v1164_v0  ;;  %1048 = vset.pattern.permute.xlu0 %v1170_v12  ;;  %p1075_p4 = scmp.lt.s32.totalorder %s1381_s29, %s1073_s9  ;;  %p1076_p5 = scmp.lt.s32.totalorder %s1074_s10, %s1068_s7 }
  0x24   : > { %378 = vperm.xlu0 %1048, %v1307_v11   ;;  %p1070_p1 = pnand %p1069_p0, %p1251_p3 }
  0x25   : > { %908 = vmatmul.mubr.msk.bf16.vlgmr.msra.gmra.mrb[0].mxu1 %vm233_vm2, %v1061_v8  ;;  %p1077_p6 = por %p1076_p5, %p1075_p4 }
  0x26   : > { %913 = vmatprep.mubr.msk.bf16.mxu1 %vm1165_vm0, %v1164_v0  ;;  %1049 = vset.pattern.permute.xlu1 %v1170_v12  ;;  %p1071_p2 = pneg %p1070_p1 }
  0x27   : > { %354 = vperm.xlu1 %1049, %v1280_v2  }
  0x28   : > { %1050 = vset.pattern.permute.xlu0 %v1171_v13  ;;  %p1078_p7 = pnand %p1077_p6, %p1071_p2 }
  0x29   : > { %383 = vperm.xlu0 %1050, %v1307_v11  }
  0x2b   : > { %358 = vperm.xlu1 %1049, %v1288_v4  }
  0x2d   : > { %1052 = vset.pattern.permute.xlu0 %v1172_v14 }
  0x2e   : > { %509 = vperm.xlu0 %1052, %v1307_v11  }
  0x2f   : > { %1051 = vset.pattern.permute.xlu1 %v1171_v13 }
  0x30   : > { %364 = vperm.xlu1 %1051, %v1280_v2  }
  0x32   : > { %490 = vperm.xlu0 %1052, %v1288_v4  }
  0x34   : > { %368 = vperm.xlu1 %1051, %v1288_v4  }
  0x36   : > { %1056 = vset.pattern.permute.xlu0 %v1173_v15 }
  0x37   : > { %500 = vperm.xlu0 %1056, %v1288_v4  }
  0x38   : > { %1053 = vset.pattern.permute.xlu1 %v1173_v15 }
  0x39   : > { %514 = vperm.xlu1 %1053, %v1307_v11  }
  0x3b   : > { %527 = vperm.xlu0 %1056, %v217_v1  }
  0x3d   : > { %1054 = vset.pattern.permute.xlu1 %v1172_v14 }
  0x3e   : > { %486 = vperm.xlu1 %1054, %v1280_v2  }
  0x42   : > { %1055 = vset.pattern.permute.xlu1 %v1173_v15 }
  0x43   : > { %496 = vperm.xlu1 %1055, %v1280_v2  }
  0x47   : > { %1057 = vset.pattern.permute.xlu1 %v1174_v3 }
  0x48   : > { %481 = vperm.xlu1 %1057, %v1280_v2  }
  0x4c   : > { %1058 = vset.pattern.permute.xlu1 %v1172_v14  ;;  %v201_v14 = vld [vmem:[%s1441_s1 + $0x10] sm:$0xf] }
  0x4d   : > { %522 = vperm.xlu1 %1058, %v217_v1  }
  0x93   : > { %v284_v16 = vpop.permute.xlu1 %283 }
  0x94   : > { %v221_v20 = vpop.permute.xlu0 %220 }
  0x97   : > { %v288_v17 = vpop.permute.xlu1 %287 }
  0x98   : > { %v226_v22 = vpop.permute.xlu0 %225 }
  0x9c   : > { %v298_v18 = vpop.permute.xlu1 %297 }
  0x9d   : > { %v294_v24 = vpop.permute.xlu0 %293 }
  0xa1   : > { %v307_v19 = vpop.permute.xlu1 %306 }
  0xa3   : > { %v379_v26 = vpop.permute.xlu0 %378 }
  0xa6   : > { %v355_v21 = vpop.permute.xlu1 %354 }
  0xa8   : > { %v384_v28 = vpop.permute.xlu0 %383 }
  0xaa   : > { %v359_v23 = vpop.permute.xlu1 %358 }
  0xad   : > { %v510_v30 = vpop.permute.xlu0 %509 }
  0xaf   : > { %v365_v25 = vpop.permute.xlu1 %364 }
  0xb1   : > { %v491_v32 = vpop.permute.xlu0 %490 }
  0xb3   : > { %v369_v27 = vpop.permute.xlu1 %368 }
  0xb6   : > { %v501_v47 = vpop.permute.xlu0 %500 }
  0xb8   : > { %v515_v29 = vpop.permute.xlu1 %514 }
  0xbd   : > { %v487_v31 = vpop.permute.xlu1 %486 }
  0xc2   : > { %v497_v41 = vpop.permute.xlu1 %496 }
  0xf8   : > { %v275_v33 = vpop.f32.mrb[0].mxu1 }
  0xf9   : > { %v276_v34 = vadd.f32 %v275_v33, %v221_v20  ;;  %v909_v35 = vpop.f32.mrb[1].mxu1 }
  0xfa   : > { %v278_v36 = vpop.f32.mrb[2].mxu1 }
  0xfb   : > { %v290_v37 = vmul.f32 %v284_v16, %v276_v34  ;;  %v361_v38 = vmul.f32 %v355_v21, %v276_v34  ;;  %v279_v39 = vadd.f32 %v278_v36, %v226_v22  ;;  %v910_v40 = vpop.f32.mrb[3].mxu1  ;;  %v493_v42 = vmul.f32 %v487_v31, %v276_v34  ;;  %v1063_v22 = vld [vmem:[%s1441_s1 + $0x2c] sm:$0xff]   ;;  %v482_v31 = vpop.permute.xlu1 %481 }
  0xfc   : > { %v528_v40 = vpop.permute.xlu0 %527 }
  0xfd   : > { %v300_v43 = vadd.f32 %v294_v24, %v290_v37  ;;  %v371_v44 = vadd.f32 %v365_v25, %v361_v38  ;;  %v291_v45 = vmul.f32 %v288_v17, %v279_v39  ;;  %v362_v46 = vmul.f32 %v359_v23, %v279_v39 }
  0xfe   : > { %v503_v48 = vadd.f32 %v497_v41, %v493_v42  ;;  %v494_v49 = vmul.f32 %v491_v32, %v279_v39 }
  0xff   : > { %v301_v50 = vadd.f32 %v298_v18, %v291_v45  ;;  %v372_v51 = vadd.f32 %v369_v27, %v362_v46  ;;  %v302_v53 = vmax.f32 %v300_v43, 0.0  ;;  %v373_v54 = vmax.f32 %v371_v44, 0.0  ;;  %v1064_v27 = vld [vmem:[%s1441_s1 + $0x14] sm:$0xff]   ;;  %v523_v36 = vpop.permute.xlu1 %522 }
 0x100   : > { %v504_v52 = vadd.f32 %v501_v47, %v494_v49  ;;  %v505_v57 = vmax.f32 %v503_v48, 0.0 }
 0x101   : > { %v303_v55 = vmax.f32 %v301_v50, 0.0  ;;  %v374_v56 = vmax.f32 %v372_v51, 0.0 }
 0x102   : > { %v506_v58 = vmax.f32 %v504_v52, 0.0 }
 0x103   : > { %v304_v59 = vpack.c.bf16 %v303_v55, %v302_v53  ;;  %v375_v60 = vpack.c.bf16 %v374_v56, %v373_v54 }
 0x104   : > { %v507_v61 = vpack.c.bf16 %v506_v58, %v505_v57 }
 0x105   : > { %912 = vmatpush3.bf16.msra.mxu1 %v304_v59 }
 0x106   : > { %923 = vmatprep.subr.bf16.mxu1 %v1164_v0 }
 0x108   : > { %914 = vmatmul.mubr.msk.bf16.vlgmr.msra.gmra.mrb[4].mxu1 %vm309_vm3, %v199_v62 }
 0x109   : > { %924 = vmatpush3.bf16.msra.mxu1 %v375_v60  ;;  %925 = vmatprep.mubr.msk.bf16.mxu1 %vm1165_vm0, %v1164_v0 }
 0x110   : > { %926 = vmatmul.mubr.msk.bf16.vlgmr.msra.gmra.mrb[8].mxu1 %vm309_vm3, %v200_v63 }
 0x1db   : > { %v347_v5 = vpop.f32.mrb[4].mxu1 }
 0x1dc   : > { %v348_v0 = vadd.f32 %v347_v5, %v307_v19  ;;  %v915_v6 = vpop.f32.mrb[5].mxu1  ;;  %v1062_v19 = vld [vmem:[%s1441_s1 + $0x24] sm:$0xff]  }
 0x1dd   : > { %v350_v7 = vpop.f32.mrb[6].mxu1 }
 0x1de   : > { %v381_v8 = vmul.f32 %v379_v26, %v348_v0  ;;  %v512_v9 = vmul.f32 %v510_v30, %v348_v0  ;;  %v916_v10 = vpop.f32.mrb[7].mxu1  ;;  %v1175_v30 = vmov 3  }
 0x1df   : > { %1059 = vset.pattern.permute.xlu1 %v1175_v30  ;;  %1060 = vset.pattern.permute.xlu0 %v1175_v30 }
 0x1e0   : > { %v517_v12 = vadd.f32 %v515_v29, %v512_v9  ;;  %v386_v13 = vadd.f32 %v384_v28, %v381_v8  ;;  %v1065_v28 = vld [vmem:[%s1441_s1 + $0x1c] sm:$0xff]   ;;  %v1066_v29 = vld [vmem:[%s1441_s1 + $0x34] sm:$0xff]   ;;  %739 = vperm.xlu1 %1059, %v1280_v2   ;;  %743 = vperm.xlu0 %1060, %v1288_v4  }
 0x1e2   : > { %v518_v15 = vmax.f32 %v517_v12, 0.0  ;;  %v387_v16 = vmax.f32 %v386_v13, 0.0 }
 0x1e3   : > { %v474_v23 = vpop.f32.mrb[8].mxu1 }
 0x1e4   : > { %v388_v17 = vpack.c.bf16 %v387_v16, %v387_v16  ;;  %v519_v18 = vpack.c.bf16 %v518_v15, %v518_v15  ;;  %v927_v24 = vpop.f32.mrb[9].mxu1  ;;  %747 = vperm.xlu1 %1059, %v1307_v11   ;;  %v1067_v11 = vld [vmem:[%s1441_s1 + $0x3c] sm:$0xff]  }
 0x1e5   : > { %v477_v25 = vpop.f32.mrb[10].mxu1 }
 0x1e6   : > { %v395_v20 = vsel %vm393_vm4, %v388_v17, 0  ;;  %v550_v21 = vsel %vm393_vm4, %v519_v18, 0  ;;  %v928_v26 = vpop.f32.mrb[11].mxu1 }
 0x1e7   : > { %918 = vmatpush3.bf16.msra.mxu0 %v395_v20 }
 0x1e8   : > { %955 = vmatprep.subr.msk.bf16.mxu0 %vm393_vm4, %v519_v18  ;;  %751 = vperm.xlu1 %1059, %v217_v1  }
 0x1ea   : > { %920 = vmatmul.mubr.msk.bf16.vlgmr.msra.gmra.mrb[0].mxu0 %vm389_vm5, %v201_v14 }
 0x1eb   : > { %930 = vmatpush3.bf16.msra.mxu0 %v550_v21  ;;  %931 = vmatprep.mubr.msk.bf16.mxu0 %vm389_vm5, %v1062_v19 }
 0x1ec   : > { %935 = vmatprep.subr.bf16.mxu0 %v507_v61 }
 0x1f2   : > { %932 = vmatmul.mubr.msk.bf16.vlgmr.msra.gmra.mrb[4].mxu0 %vm389_vm5, %v1063_v22 }
 0x1f3   : > { %936 = vmatpush3.bf16.msra.mxu0 %v507_v61  ;;  %937 = vmatprep.mubr.msk.bf16.mxu0 %vm309_vm3, %v1064_v27 }
 0x1fe   : > { %938 = vmatmul.mubr.msk.bf16.vlgmr.msra.gmra.mrb[4].mxu0 %vm309_vm3, %v1065_v28 }
 0x1ff   : > { %943 = vmatprep.mubr.msk.bf16.mxu0 %vm389_vm5, %v1066_v29 }
 0x25f   : > { %v740_v43 = vpop.permute.xlu1 %739  ;;  %v744_v48 = vpop.permute.xlu0 %743 }
 0x263   : > { %v748_v44 = vpop.permute.xlu1 %747 }
 0x267   : > { %v752_v50 = vpop.permute.xlu1 %751 }
 0x2bd   : > { %v431_v32 = vpop.f32.mrb[0].mxu0 }
 0x2be   : > { %v475_v33 = vadd.f32 %v474_v23, %v431_v32  ;;  %v921_v34 = vpop.f32.mrb[1].mxu0 }
 0x2bf   : > { %v434_v35 = vpop.f32.mrb[2].mxu0 }
 0x2c0   : > { %v922_v37 = vpop.f32.mrb[3].mxu0  ;;  %v484_v38 = vadd.f32 %v482_v31, %v475_v33 }
 0x2c2   : > { %v525_v39 = vmul.f32 %v523_v36, %v484_v38 }
 0x2c4   : > { %v530_v41 = vadd.f32 %v528_v40, %v525_v39 }
 0x2c6   : > { %v531_v2 = vmax.f32 %v530_v41, 0.0 }
 0x2c8   : > { %v532_v42 = vpack.c.bf16 %v531_v2, %v531_v2 }
 0x2ca   : > { %956 = vmatprep.subr.msk.bf16.mxu0 %vm393_vm4, %v532_v42  ;;  %v683_v4 = vsel %vm393_vm4, %v532_v42, 0 }
 0x2cb   : > { %942 = vmatpush3.bf16.msra.mxu0 %v683_v4 }
 0x2ce   : > { %944 = vmatmul.mubr.msk.bf16.vlgmr.msra.gmra.mrb[4].mxu0 %vm389_vm5, %v1067_v11 }
 0x3a1   : > { %v945_v45 = vpop.f32.mrb[4].mxu0 }
 0x3a2   : > { %v756_v46 = vadd.f32 %v945_v45, %v748_v44  ;;  %v719_v47 = vpop.f32.mrb[5].mxu0 }
 0x3a3   : > { %v754_v49 = vadd.f32 %v740_v43, %v719_v47  ;;  %v946_v51 = vpop.f32.mrb[6].mxu0 }
 0x3a4   : > { %760 = vst [vmem:[%s185_s28 + $0x10] sm:$0xff] %v756_v46  ;;  %v757_v52 = vadd.f32 %v946_v51, %v752_v50  ;;  %v722_v53 = vpop.f32.mrb[7].mxu0 }
 0x3a5   : > { %758 = vst [vmem:[%s185_s28] sm:$0xff] %v754_v49  ;;  %v755_v54 = vadd.f32 %v744_v48, %v722_v53 }
 0x3a6   : > { %761 = vst [vmem:[%s185_s28 + $0x18] sm:$0xff] %v757_v52 }
 0x3a7   : > { %759 = vst [vmem:[%s185_s28 + $0x8] sm:$0xff] %v755_v54 }
 0x3a8   : > { %1081 = shalt.err (!%p1078_p7)
}
 0x3a9   : > { %s1082_s11 = scalar_lea.hbm %s1386_s5, 512  ;;  %s1086_s24 = scalar_lea.hbm %s1443_s3, 2048 }
 0x3aa   : > { %p1083_p9 = scmp.ne.s32.totalorder %s1386_s5, %s1082_s11  ;;  %p1087_p12 = scmp.lt.u32.totalorder %s1386_s5, %s1443_s3 }
 0x3ab   : > { %p1088_p13 = scmp.lt.u32.totalorder %s1086_s24, %s1082_s11  ;;  %p1090_p1 = scmp.lt.u32.totalorder %s1082_s11, %s1386_s5 }
 0x3ac   : > { %p1084_p10 = pnand %p1083_p9, %p1251_p3 }
 0x3ad   : > { %p1089_p0 = por %p1088_p13, %p1087_p12 }
 0x3ae   : > { %p1085_p11 = pneg %p1084_p10 }
 0x3af   : > { %p1091_p2 = por %p1090_p1, %p1089_p0 }
 0x3b1   : > { %p1092_p4 = pnand %p1091_p2, %p1085_p11 }
 0x3b3   : > { %1095 = shalt.err (!%p1092_p4)
}
 0x3b4   : > { %s1177_s4 = smov 128   ;;  %s1178_s15 = smov 256  }
 0x3b5   : > { %s1179_s16 = smov 8  }
 0x3b6   : > { %957 = dma.vmem_to_hbm [thread:$0]  (%p1251_p3), %s1381_s29, 512, %s1386_s5, %s1388_s6, %s1177_s4, %s1178_s15, %s1179_s16  }
 0x3b7 PF: > { %p963_p5 = scmp.ge.s32.totalorder %s1162_s19, 2  ;;  %s792_s7 = sand.u32 1, %s1134_s12  }
 0x3b8   : > { %s793_s8 = scalar_lea.sflag [#allocation3], %s792_s7 }
 0x3b9   : > { %p960_p6 = pnand %p963_p5, %p1260_p8 }
 0x3bb   : > { %1129 = dma.done.wait (!%p960_p6), %s793_s8, 512  }
 0x3bc   : > { %1131 = vsyncadd (!%p960_p6), %s793_s8, 4294966784  ;;  %s16_s19 = sadd.s32 1, %s1162_s19   ;;  %s1446_s12 = smov %s1138_s13 }
 0x3bd   : > { %p13_p7 = scmp.ge.s32.totalorder %s16_s19, 6   ;;  %s1447_s13 = smov %s1142_s14 }
 0x3be   : > { %s1448_s14 = smov %s1269_s30  ;;  %s1449_s15 = smov %s1154_s17 }
 0x3bf   : > { %s1450_s16 = smov %s1158_s18  ;;  %s1451_s17 = smov %s1454_s22 }
 0x3c0   : > { %s1452_s18 = smov %s1458_s23  ;;  %15 = sbr.rel (!%p13_p7) target bundleno = 5 (0x5), region = 67 }
 0x3c7   :  { %798 = vsyncpa [#allocation3], 1 }
 0x3c8   :  { %800 = vsyncpa [#allocation3 + $0x1], 1 }

</bundles_post_ra>
